<compile_context>
chip_gen: v7x
topology: tpu7x:2x2x1
jax: 0.10.0
libtpu: 0.0.40
codegen_flags: <defaults>
</compile_context>

<pallas_src>
import functools

import numpy as np
import jax
import jax.numpy as jnp
from jax.experimental import pallas as pl
from jax.experimental.pallas import tpu as pltpu

_MIB = 1024 * 1024


# --------------------------------------------------------------------------
# Helpers: padding / tile planning / VMEM accounting
# --------------------------------------------------------------------------
def _round_up(x, m):
    return ((x + m - 1) // m) * m


def _vmem_capacity_bytes():
    """Generation-aware VMEM capacity (falls back to the smallest real value)."""
    try:
        return int(pltpu.get_tpu_info().vmem_capacity_bytes)
    except Exception:
        return 64 * _MIB  # v7x per-TensorCore VMEM — most conservative


def _pick_divisor_tile(dim_pad, cap):
    """Largest multiple of 128 that divides dim_pad (a 128-multiple) and is <= cap."""
    best = 128
    t = 128
    hi = min(dim_pad, cap)
    while t <= hi:
        if dim_pad % t == 0:
            best = t
        t += 128
    return best


def _tm_candidates(batch):
    if batch >= 512:
        return (512, 256, 128)
    if batch >= 256:
        return (256, 128)
    if batch >= 128:
        return (128,)
    return (_round_up(max(batch, 1), 16),)  # bf16 sublane packing (16, 128)


def _resident_bytes(tm, k_pad, tn, out_bytes):
    """VMEM footprint of the single-pass (no K reduction axis) path."""
    return (2 * tm * k_pad * 2          # X block, bf16, double-buffered
            + 2 * k_pad * tn * 2        # W column panel, bf16, double-buffered
            + 2 * tm * tn * out_bytes   # output block, double-buffered
            + 2 * 2 * tn * 4            # bias + low_rank (f32), double-buffered
            + 3 * tm * tn * 4)          # f32 matmul result + epilogue temporaries


def _tiled_bytes(tm, tk, tn, out_bytes):
    """VMEM footprint of the general (i, j, k) accumulator path."""
    return (2 * tm * tk * 2             # X tile
            + 2 * tk * tn * 2           # W tile
            + 2 * tm * tn * out_bytes   # output tile
            + 2 * 2 * tn * 4            # bias + low_rank
            + tm * tn * 4               # f32 accumulator scratch
            + 2 * tm * tn * 4)          # epilogue temporaries


def _plan_resident(batch, k_pad, n_pad, budget, tn_cap, out_bytes):
    """Pick (tm, tn) for the single-pass path, or None if it cannot fit VMEM."""
    for tm in _tm_candidates(batch):
        best_tn = None
        t = 128
        hi = min(n_pad, tn_cap)
        while t <= hi:
            if n_pad % t == 0 and _resident_bytes(tm, k_pad, t, out_bytes) <= budget:
                best_tn = t
            t += 128
        if best_tn is not None:
            return tm, best_tn
    return None


def _plan_tiled(batch, k_pad, n_pad, budget, out_bytes):
    """Pick (tm, tn, tk) for the general tiled path (always returns something)."""
    tn_opts = sorted({_pick_divisor_tile(n_pad, 512),
                      _pick_divisor_tile(n_pad, 256), 128}, reverse=True)
    tk_opts = sorted({_pick_divisor_tile(k_pad, 512),
                      _pick_divisor_tile(k_pad, 256), 128}, reverse=True)
    for tm in _tm_candidates(batch):
        for tn in tn_opts:
            for tk in tk_opts:
                if _tiled_bytes(tm, tk, tn, out_bytes) <= budget:
                    return tm, tn, tk
    return _tm_candidates(batch)[-1], 128, 128


# --------------------------------------------------------------------------
# Kernel A: single-pass path.  Grid = (N panels, batch blocks); the whole K
# reduction lives inside one jnp.dot so no accumulator scratch is needed.
# --------------------------------------------------------------------------
def _pop_rerank_resident_kernel(x_ref, w_ref, b_ref, lr_ref, o_ref,
                                *, threshold_l, threshold_h):
    # (tm, K) bf16 @ (K, tn) bf16 -> f32 on the MXU.
    result = jnp.dot(x_ref[...], w_ref[...],
                     preferred_element_type=jnp.float32)
    result = result + b_ref[...]                       # (tm, tn) + (1, tn)
    low_rank = lr_ref[...]                              # (1, tn) broadcast
    proc = jnp.where(result > threshold_h, result + 10.0, low_rank)
    proc = jnp.where(result > threshold_l, proc, jnp.zeros_like(proc))
    o_ref[...] = proc.astype(o_ref.dtype)


# --------------------------------------------------------------------------
# Kernel B: general (i, j, k) tiling with an f32 VMEM accumulator.
# --------------------------------------------------------------------------
def _pop_rerank_tiled_kernel(x_ref, w_ref, b_ref, lr_ref, o_ref, acc_ref,
                             *, threshold_l, threshold_h):
    k = pl.program_id(2)

    @pl.when(k == 0)
    def _():
        acc_ref[...] = jnp.zeros_like(acc_ref)

    acc_ref[...] += jnp.dot(x_ref[...], w_ref[...],
                            preferred_element_type=jnp.float32)

    @pl.when(k == pl.num_programs(2) - 1)
    def _():
        result = acc_ref[...] + b_ref[...]              # (tm, tn) + (1, tn)
        proc = jnp.where(result > threshold_h, result + 10.0, lr_ref[...])
        proc = jnp.where(result > threshold_l, proc, jnp.zeros_like(proc))
        o_ref[...] = proc.astype(o_ref.dtype)


# --------------------------------------------------------------------------
# Wrapper
# --------------------------------------------------------------------------
def pop_rerank(x, w, b, low_rank, threshold_l, threshold_h, *,
               force_tiled=False, resident_tn_cap=2048,
               out_dtype=jnp.float32, vmem_fraction=0.7):
    """Fused linear-learner + popularity rerank.

    x: (B, K) f32, w: (K, N) f32, b: (N,) f32, low_rank: (N,) f32.
    Returns (B, N) `out_dtype` (default f32).
    """
    B, K = x.shape
    Kw, N = w.shape
    assert K == Kw, "feature dims of X and W must match"
    assert b.shape == (N,) and low_rank.shape == (N,)

    out_bytes = np.dtype(out_dtype).itemsize
    capacity = _vmem_capacity_bytes()
    budget = int(vmem_fraction * capacity)

    # Pad K/N only to 128-multiples (tiles are chosen as divisors of the
    # padded size), instead of padding up to a full 512-wide tile.
    K_pad = _round_up(K, 128)
    N_pad = _round_up(N, 128)

    plan = None if force_tiled else _plan_resident(
        B, K_pad, N_pad, budget, resident_tn_cap, out_bytes)

    if plan is not None:
        tm, tn = plan
        B_pad = _round_up(B, tm)
        # Ensure >= 2 "parallel" grid blocks when N allows, so both v7x
        # TensorCores get work even at tiny batch.
        if (N_pad // tn) * (B_pad // tm) < 2 and N_pad >= 256:
            tn = _pick_divisor_tile(N_pad, max(N_pad // 2, 128))
        footprint = _resident_bytes(tm, K_pad, tn, out_bytes)
        tk = None
    else:
        tm, tn, tk = _plan_tiled(B, K_pad, N_pad, budget, out_bytes)
        B_pad = _round_up(B, tm)
        footprint = _tiled_bytes(tm, tk, tn, out_bytes)

    # Scoped-VMEM limit sized to the actual footprint (with margin for
    # compiler-internal scratch), never above ~90% of physical VMEM.
    vmem_limit = int(min(0.9 * capacity, max(2 * footprint, 32 * _MIB)))

    # ---- operand prep: bf16 matmul inputs, f32 epilogue vectors ----------
    xb = x.astype(jnp.bfloat16)
    wb = w.astype(jnp.bfloat16)
    if (B_pad, K_pad) != (B, K):
        xb = jnp.pad(xb, ((0, B_pad - B), (0, K_pad - K)))
    if (K_pad, N_pad) != (K, N):
        wb = jnp.pad(wb, ((0, K_pad - K), (0, N_pad - N)))
    b2 = jnp.pad(b.astype(jnp.float32), (0, N_pad - N)).reshape(1, N_pad)
    lr2 = jnp.pad(low_rank.astype(jnp.float32),
                  (0, N_pad - N)).reshape(1, N_pad)

    cost = pl.CostEstimate(
        flops=2 * B_pad * K_pad * N_pad,
        transcendentals=0,
        bytes_accessed=(xb.size * 2 + wb.size * 2
                        + b2.size * 4 + lr2.size * 4
                        + B_pad * N_pad * out_bytes),
    )

    if plan is not None:
        kernel = functools.partial(_pop_rerank_resident_kernel,
                                   threshold_l=float(threshold_l),
                                   threshold_h=float(threshold_h))
        out = pl.pallas_call(
            kernel,
            out_shape=jax.ShapeDtypeStruct((B_pad, N_pad), out_dtype),
            grid_spec=pltpu.PrefetchScalarGridSpec(
                num_scalar_prefetch=0,
                # N panels outermost, batch innermost: each W column panel is
                # DMA'd once and reused across all batch blocks.
                grid=(N_pad // tn, B_pad // tm),
                in_specs=[
                    pl.BlockSpec((tm, K_pad), lambda j, i: (i, 0)),   # X
                    pl.BlockSpec((K_pad, tn), lambda j, i: (0, j)),   # W panel
                    pl.BlockSpec((1, tn), lambda j, i: (0, j)),       # bias
                    pl.BlockSpec((1, tn), lambda j, i: (0, j)),       # low_rank
                ],
                out_specs=pl.BlockSpec((tm, tn), lambda j, i: (i, j)),
            ),
            compiler_params=pltpu.CompilerParams(
                dimension_semantics=("parallel", "parallel"),
                vmem_limit_bytes=vmem_limit),
            cost_estimate=cost,
        )(xb, wb, b2, lr2)
    else:
        kernel = functools.partial(_pop_rerank_tiled_kernel,
                                   threshold_l=float(threshold_l),
                                   threshold_h=float(threshold_h))
        out = pl.pallas_call(
            kernel,
            out_shape=jax.ShapeDtypeStruct((B_pad, N_pad), out_dtype),
            grid_spec=pltpu.PrefetchScalarGridSpec(
                num_scalar_prefetch=0,
                grid=(B_pad // tm, N_pad // tn, K_pad // tk),
                in_specs=[
                    pl.BlockSpec((tm, tk), lambda i, j, k: (i, k)),   # X
                    pl.BlockSpec((tk, tn), lambda i, j, k: (k, j)),   # W
                    pl.BlockSpec((1, tn), lambda i, j, k: (0, j)),    # bias
                    pl.BlockSpec((1, tn), lambda i, j, k: (0, j)),    # low_rank
                ],
                out_specs=pl.BlockSpec((tm, tn), lambda i, j, k: (i, j)),
                scratch_shapes=[pltpu.VMEM((tm, tn), jnp.float32)],
            ),
            compiler_params=pltpu.CompilerParams(
                dimension_semantics=("parallel", "parallel", "arbitrary"),
                vmem_limit_bytes=vmem_limit),
            cost_estimate=cost,
        )(xb, wb, b2, lr2)

    return out[:B, :N]


def make_low_rank(counts):
    """Replicates:  _, indices = T.sort(counts, descending=False)
                    low_rank = 1 - indices / T.max(indices)."""
    indices = jnp.argsort(counts)                       # ascending sort indices
    indices_f = indices.astype(jnp.float32)
    return 1.0 - indices_f / jnp.max(indices_f)


# --------------------------------------------------------------------------
# Demo / self-test
# --------------------------------------------------------------------------
if __name__ == "__main__":
    key = jax.random.PRNGKey(0)
    k_x, k_w, k_b, k_c, k_x2, k_w2, k_b2, k_c2 = jax.random.split(key, 8)

    def reference(x, w, b, low_rank, tl, th):
        # Pure-JAX reference with the same bf16-rounded matmul operands.
        xb = x.astype(jnp.bfloat16)
        wb = w.astype(jnp.bfloat16)
        r = jnp.dot(xb, wb, preferred_element_type=jnp.float32) + b[None, :]
        p = jnp.where(r > th, r + 10.0, low_rank[None, :])
        return jnp.where(r > tl, p, jnp.zeros_like(p))

    threshold_l, threshold_h = 0.2, 1.0

    # Case 1 & 2: small rerank problem; resident single-panel path and the
    # forced general tiled accumulator path.
    B, K, N = 8, 256, 128
    x = jax.random.normal(k_x, (B, K), dtype=jnp.float32)
    w = jax.random.normal(k_w, (K, N), dtype=jnp.float32) * 0.05
    b = jax.random.normal(k_b, (N,), dtype=jnp.float32) * 0.1
    counts = jax.random.randint(k_c, (N,), 0, 1000).astype(jnp.float32)
    low_rank = make_low_rank(counts)

    out_resident = jax.block_until_ready(
        pop_rerank(x, w, b, low_rank, threshold_l, threshold_h))
    out_tiled = jax.block_until_ready(
        pop_rerank(x, w, b, low_rank, threshold_l, threshold_h,
                   force_tiled=True))
    ref = reference(x, w, b, low_rank, threshold_l, threshold_h)
    assert out_resident.shape == (B, N)
    assert out_tiled.shape == (B, N)
    assert jnp.allclose(out_resident, ref, atol=1e-3, rtol=1e-3), \
        "resident-path mismatch vs reference"
    assert jnp.allclose(out_tiled, ref, atol=1e-3, rtol=1e-3), \
        "tiled-path mismatch vs reference"

    # Case 3: multi-panel resident grid (N outermost, batch innermost).
    B2, K2, N2 = 8, 256, 384
    x2 = jax.random.normal(k_x2, (B2, K2), dtype=jnp.float32)
    w2 = jax.random.normal(k_w2, (K2, N2), dtype=jnp.float32) * 0.05
    b2 = jax.random.normal(k_b2, (N2,), dtype=jnp.float32) * 0.1
    counts2 = jax.random.randint(k_c2, (N2,), 0, 1000).astype(jnp.float32)
    low_rank2 = make_low_rank(counts2)

    out_panels = jax.block_until_ready(
        pop_rerank(x2, w2, b2, low_rank2, threshold_l, threshold_h,
                   resident_tn_cap=128))
    ref2 = reference(x2, w2, b2, low_rank2, threshold_l, threshold_h)
    assert out_panels.shape == (B2, N2)
    assert jnp.allclose(out_panels, ref2, atol=1e-3, rtol=1e-3), \
        "multi-panel resident path mismatch vs reference"

    print("KERNEL_OK")
</pallas_src>

<mosaic_0001>
module attributes {stable_mosaic.version = 11 : i64} {
  func.func @_pop_rerank_resident_kernel(%arg0: i32, %arg1: i32, %arg2: memref<16x256xbf16, #tpu.memory_space<vmem>>, %arg3: memref<256x128xbf16, #tpu.memory_space<vmem>>, %arg4: memref<1x128xf32, #tpu.memory_space<vmem>>, %arg5: memref<1x128xf32, #tpu.memory_space<vmem>>, %arg6: memref<16x128xf32, #tpu.memory_space<vmem>>) attributes {dimension_semantics = [#tpu.dimension_semantics<parallel>, #tpu.dimension_semantics<parallel>], iteration_bounds = array<i64: 1, 1>, scalar_prefetch = 0 : i64, scratch_operands = 0 : i64, tpu.core_type = #tpu.core_type<tc>, window_params = [{transform_indices = @transform_0, window_bounds = array<i64: 16, 256>}, {transform_indices = @transform_1, window_bounds = array<i64: 256, 128>}, {transform_indices = @transform_2, window_bounds = array<i64: 1, 128>}, {transform_indices = @transform_3, window_bounds = array<i64: 1, 128>}, {transform_indices = @transform_4, window_bounds = array<i64: 16, 128>}]} {
    %c0 = arith.constant 0 : index
    %c0_0 = arith.constant 0 : index
    %0 = vector.load %arg2[%c0, %c0_0] : memref<16x256xbf16, #tpu.memory_space<vmem>>, vector<16x256xbf16>
    %c0_1 = arith.constant 0 : index
    %c0_2 = arith.constant 0 : index
    %1 = vector.load %arg3[%c0_1, %c0_2] : memref<256x128xbf16, #tpu.memory_space<vmem>>, vector<256x128xbf16>
    %cst = arith.constant dense<0.000000e+00> : vector<16x128xf32>
    %2 = tpu.matmul %0, %1, %cst {dimension_numbers = #tpu.dot_dimension_numbers<[1], [0], [0], [1], [0, 0, 1, 1], [], []>} : vector<16x256xbf16>, vector<256x128xbf16>, vector<16x128xf32> -> vector<16x128xf32>
    %c0_3 = arith.constant 0 : index
    %c0_4 = arith.constant 0 : index
    %3 = vector.load %arg4[%c0_3, %c0_4] : memref<1x128xf32, #tpu.memory_space<vmem>>, vector<1x128xf32>
    %4 = vector.broadcast %3 : vector<1x128xf32> to vector<16x128xf32>
    %5 = arith.addf %2, %4 : vector<16x128xf32>
    %c0_5 = arith.constant 0 : index
    %c0_6 = arith.constant 0 : index
    %6 = vector.load %arg5[%c0_5, %c0_6] : memref<1x128xf32, #tpu.memory_space<vmem>>, vector<1x128xf32>
    %cst_7 = arith.constant 1.000000e+00 : f32
    %7 = vector.broadcast %cst_7 : f32 to vector<16x128xf32>
    %8 = arith.cmpf ogt, %5, %7 : vector<16x128xf32>
    %cst_8 = arith.constant 1.000000e+01 : f32
    %9 = vector.broadcast %cst_8 : f32 to vector<16x128xf32>
    %10 = arith.addf %5, %9 : vector<16x128xf32>
    %11 = vector.shape_cast %6 : vector<1x128xf32> to vector<1x128xf32>
    %12 = vector.broadcast %11 : vector<1x128xf32> to vector<16x128xf32>
    %13 = arith.select %8, %10, %12 : vector<16x128xi1>, vector<16x128xf32>
    %cst_9 = arith.constant 2.000000e-01 : f32
    %14 = vector.broadcast %cst_9 : f32 to vector<16x128xf32>
    %15 = arith.cmpf ogt, %5, %14 : vector<16x128xf32>
    %cst_10 = arith.constant 0.000000e+00 : f32
    %16 = vector.broadcast %cst_10 : f32 to vector<16x128xf32>
    %17 = arith.select %15, %13, %16 : vector<16x128xi1>, vector<16x128xf32>
    %c0_11 = arith.constant 0 : index
    %c0_12 = arith.constant 0 : index
    %18 = vector.load %arg6[%c0_11, %c0_12] : memref<16x128xf32, #tpu.memory_space<vmem>>, vector<16x128xf32>
    tpu.vector_store %arg6[%c0_11, %c0_12], %17 {strides = array<i32>} : memref<16x128xf32, #tpu.memory_space<vmem>>, vector<16x128xf32>,
    return
  }
  func.func @transform_0(%arg0: i32, %arg1: i32) -> (i32, i32) {
    %c0_i32 = arith.constant 0 : i32
    %c0_i32_0 = arith.constant 0 : i32
    return %arg1, %c0_i32 : i32, i32
  }
  func.func @transform_1(%arg0: i32, %arg1: i32) -> (i32, i32) {
    %c0_i32 = arith.constant 0 : i32
    %c0_i32_0 = arith.constant 0 : i32
    return %c0_i32, %arg0 : i32, i32
  }
  func.func @transform_2(%arg0: i32, %arg1: i32) -> (i32, i32) {
    %c0_i32 = arith.constant 0 : i32
    %c0_i32_0 = arith.constant 0 : i32
    return %c0_i32, %arg0 : i32, i32
  }
  func.func @transform_3(%arg0: i32, %arg1: i32) -> (i32, i32) {
    %c0_i32 = arith.constant 0 : i32
    %c0_i32_0 = arith.constant 0 : i32
    return %c0_i32, %arg0 : i32, i32
  }
  func.func @transform_4(%arg0: i32, %arg1: i32) -> (i32, i32) {
    %c0_i32 = arith.constant 0 : i32
    return %arg1, %arg0 : i32, i32
  }
}

</mosaic_0001>

<bundles_post_ra>
// kernel: tpu_custom_call.1
= control target key start
LH: loop header
LB: loop body
LE: loop exit
PB: predicated region body
PF: predicated region fallthrough
CT: control target
= control target key end

     0   :  { %9 = vsyncpa [#allocation3], 0  ;;  %s492_s0 = inlined_call_operand.hbm [shape: bf16[16,256], index: 0, kind: input, shape index: {}]   ;;  %s493_s1 = inlined_call_operand.hbm [shape: bf16[256,128], index: 1, kind: input, shape index: {}]   ;;  %s494_s2 = inlined_call_operand.vmem [shape: f32[1,128], index: 2, kind: input, shape index: {}]   ;;  %s495_s3 = inlined_call_operand.vmem [shape: f32[1,128], index: 3, kind: input, shape index: {}]   ;;  %s496_s4 = inlined_call_operand.hbm [shape: f32[16,128], index: 4, kind: output, shape index: {}]  }
   0x1   :  { %10 = vsyncpa [#allocation6], 0 }
   0x2   :  { %11 = vsyncpa [#allocation4], 0  ;;  %s412_s15 = smov [#allocation2]   ;;  %s340_s19 = scalar_lea.hbm %s492_s0, 256 }
   0x3   :  { %s17_s16 = sshll.u32 %s412_s15, 4  ;;  %p341_p0 = scmp.ne.s32.totalorder %s492_s0, %s340_s19  ;;  %s18_s16 = int_to_ptr.vmem [resolvable:$true] %s17_s16 }
   0x4   :  { %p344_p1 = scmp.lt.u32.totalorder %s340_s19, %s492_s0 }
   0x6   :  { %p346_p2 = pnand %p344_p1, %p341_p0 }
   0x8   :  { %349 = shalt.err (!%p346_p2)
}
   0x9   :  { %s350_s24 = scalar_lea.vmem %s18_s16, 256  ;;  %p355_p4 = scmp.lt.s32.totalorder %s18_s16, %s18_s16 }
   0xa   :  { %p351_p3 = scmp.ne.s32.totalorder %s18_s16, %s350_s24  ;;  %p356_p5 = scmp.lt.s32.totalorder %s350_s24, %s350_s24 }
   0xc   :  { %p357_p6 = por %p356_p5, %p355_p4 }
   0xe   :  { %p358_p7 = pnand %p357_p6, %p351_p3 }
  0x10   :  { %361 = shalt.err (!%p358_p7)
}
  0x11   :  { %s413_s25 = smov 128   ;;  %s414_s26 = smov 8  }
  0x12   :  { %23 = dma.hbm_to_vmem [thread:$0]  %s492_s0, 256, %s18_s16, [#allocation3], %s413_s25, %s413_s25, %s414_s26  }
  0x13   :  { %s415_s29 = smov [#allocation5]   ;;  %s362_s7 = scalar_lea.hbm %s493_s1, 2048 }
  0x14   :  { %s29_s30 = sshll.u32 %s415_s29, 4  ;;  %p363_p8 = scmp.ne.s32.totalorder %s493_s1, %s362_s7  ;;  %s30_s30 = int_to_ptr.vmem [resolvable:$true] %s29_s30 }
  0x15   :  { %p366_p9 = scmp.lt.u32.totalorder %s362_s7, %s493_s1 }
  0x17   :  { %p368_p10 = pnand %p366_p9, %p363_p8 }
  0x19   :  { %371 = shalt.err (!%p368_p10)
}
  0x1a   :  { %s372_s12 = scalar_lea.vmem %s30_s30, 2048  ;;  %p377_p12 = scmp.lt.s32.totalorder %s30_s30, %s30_s30 }
  0x1b   :  { %p373_p11 = scmp.ne.s32.totalorder %s30_s30, %s372_s12  ;;  %p378_p13 = scmp.lt.s32.totalorder %s372_s12, %s372_s12 }
  0x1d   :  { %p379_p0 = por %p378_p13, %p377_p12 }
  0x1f   :  { %p380_p1 = pnand %p379_p0, %p373_p11 }
  0x21   :  { %383 = shalt.err (!%p380_p1)
}
  0x22   :  { %s416_s0 = smov 64   ;;  %s417_s13 = smov 4  }
  0x23   :  { %35 = dma.hbm_to_vmem [thread:$0]  %s493_s1, 2048, %s30_s30, [#allocation6], %s416_s0, %s416_s0, %s417_s13  }
  0x24   :  { %406 = dma.done.wait [#allocation3], 256  }
  0x25   :  { %407 = vsyncadd [#allocation3], 4294967040 }
  0x26   :  { %408 = dma.done.wait [#allocation6], 2048  }
  0x27   :  { %409 = vsyncadd [#allocation6], 4294965248  ;;  %v321_v0 = vld [vmem:[#allocation5 + $0x40] sm:$0xff]   ;;  %v323_v2 = vld [vmem:[#allocation5 + $0x48] sm:$0xff]   ;;  %s418_s19 = smov [#allocation7]  }
  0x28   :  { %v322_v1 = vld [vmem:[#allocation5] sm:$0xff]   ;;  %292 = vmatprep.subr.bf16.mxu0 %v321_v0  ;;  %v324_v3 = vld [vmem:[#allocation5 + $0x8] sm:$0xff]   ;;  %v325_v4 = vld [vmem:[#allocation5 + $0x50] sm:$0xff]   ;;  %s259_s20 = sshll.u32 %s418_s19, 4  ;;  %s260_s20 = int_to_ptr.vmem [resolvable:$true] %s259_s20 }
  0x29   :  { %293 = vmatpush3.bf16.msra.mxu0 %v322_v1  ;;  %v326_v5 = vld [vmem:[#allocation5 + $0x10] sm:$0xff]   ;;  %v327_v6 = vld [vmem:[#allocation5 + $0x58] sm:$0xff]   ;;  %v329_v8 = vld [vmem:[#allocation5 + $0x60] sm:$0xff]   ;;  %p389_p3 = scmp.lt.s32.totalorder %s260_s20, %s260_s20 }
  0x2a   :  { %294 = vmatprep.subr.bf16.mxu0 %v323_v2  ;;  %v328_v7 = vld [vmem:[#allocation5 + $0x18] sm:$0xff]   ;;  %v330_v9 = vld [vmem:[#allocation5 + $0x20] sm:$0xff]   ;;  %v331_v10 = vld [vmem:[#allocation5 + $0x68] sm:$0xff]  }
  0x2b   :  { %v339_v11 = vld [vmem:[#allocation2 + $0x4] ss:$8 sps:$4 sm:$0xff]   ;;  %v332_v12 = vld [vmem:[#allocation5 + $0x28] sm:$0xff]   ;;  %v337_v17 = vld [vmem:[#allocation2] ss:$8 sps:$4 sm:$0xff]  }
  0x2c   :  { %226 = vmatprep.mubr.bf16.mxu0 %v339_v11  ;;  %v333_v13 = vld [vmem:[#allocation5 + $0x70] sm:$0xff]   ;;  %v335_v15 = vld [vmem:[#allocation5 + $0x78] sm:$0xff]  }
  0x2d   :  { %295 = vmatpush3.bf16.msra.mxu0 %v324_v3  ;;  %v334_v14 = vld [vmem:[#allocation5 + $0x30] sm:$0xff]   ;;  %v336_v16 = vld [vmem:[#allocation5 + $0x38] sm:$0xff]  }
  0x2e   :  { %296 = vmatprep.subr.bf16.mxu0 %v325_v4  ;;  %v272_v19 = vld [vmem:[%s494_s2] ss:$0 sm:$0xff]  ;;  %s384_s2 = scalar_lea.vmem %s260_s20, 256 }
  0x2f   :  { %v291_v26 = vld [vmem:[%s495_s3] ss:$0 sm:$0xff]  ;;  %p385_p2 = scmp.ne.s32.totalorder %s260_s20, %s384_s2  ;;  %p390_p4 = scmp.lt.s32.totalorder %s384_s2, %s384_s2 }
  0x31   :  { %297 = vmatpush3.bf16.msra.mxu0 %v326_v5  ;;  %p391_p5 = por %p390_p4, %p389_p3 }
  0x32   :  { %298 = vmatprep.subr.bf16.mxu0 %v327_v6 }
  0x33   :  { %p392_p6 = pnand %p391_p5, %p385_p2 }
  0x35   :  { %299 = vmatpush3.bf16.msra.mxu0 %v328_v7 }
  0x36   :  { %300 = vmatprep.subr.bf16.mxu0 %v329_v8 }
  0x39   :  { %301 = vmatpush3.bf16.msra.mxu0 %v330_v9 }
  0x3a   :  { %302 = vmatprep.subr.bf16.mxu0 %v331_v10 }
  0x3d   :  { %303 = vmatpush3.bf16.msra.mxu0 %v332_v12 }
  0x3e   :  { %304 = vmatprep.subr.bf16.mxu0 %v333_v13 }
  0x41   :  { %305 = vmatpush3.bf16.msra.mxu0 %v334_v14 }
  0x42   :  { %306 = vmatprep.subr.bf16.mxu0 %v335_v15 }
  0x45   :  { %307 = vmatpush3.bf16.msra.mxu0 %v336_v16 }
  0x48   :  { %227 = vmatmul.mubr.bf16.vlgmr.msra.gmra.mrb[0].mxu0 %v337_v17 }
 0x11b   :  { %v308_v18 = vpop.f32.mrb[0].mxu0 }
 0x11c   :  { %v309_v20 = vpop.f32.mrb[1].mxu0 }
 0x11d   :  { %v310_v21 = vadd.f32 %v309_v20, %v308_v18  ;;  %v311_v22 = vpop.f32.mrb[2].mxu0 }
 0x11e   :  { %v312_v23 = vpop.f32.mrb[3].mxu0 }
 0x11f   :  { %v229_v24 = vadd.f32 %v310_v21, %v272_v19  ;;  %v313_v25 = vadd.f32 %v312_v23, %v311_v22 }
 0x121   :  { %vm236_vm0 = vcmp.gt.f32.partialorder %v229_v24, 1.0  ;;  %v238_v27 = vadd.f32 10.0, %v229_v24  ;;  %v232_v28 = vadd.f32 %v313_v25, %v272_v19  ;;  %vm248_vm2 = vcmp.gt.f32.partialorder %v229_v24, 0.2 }
 0x123   :  { %vm237_vm1 = vcmp.gt.f32.partialorder %v232_v28, 1.0  ;;  %v239_v29 = vadd.f32 10.0, %v232_v28  ;;  %v246_v30 = vsel %vm236_vm0, %v238_v27, %v291_v26  ;;  %vm249_vm3 = vcmp.gt.f32.partialorder %v232_v28, 0.2 }
 0x124   :  { %v250_v31 = vsel %vm248_vm2, %v246_v30, 0.0 }
 0x125   :  { %v247_v32 = vsel %vm237_vm1, %v239_v29, %v291_v26  ;;  %252 = vst [vmem:[#allocation7] sm:$0xff] %v250_v31 }
 0x126   :  { %v251_v33 = vsel %vm249_vm3, %v247_v32, 0.0 }
 0x127   :  { %253 = vst [vmem:[#allocation7 + $0x8] sm:$0xff] %v251_v33 }
 0x128   :  { %395 = shalt.err (!%p392_p6)
}
 0x129   :  { %s396_s22 = scalar_lea.hbm %s496_s4, 256 }
 0x12a   :  { %p397_p7 = scmp.ne.s32.totalorder %s496_s4, %s396_s22  ;;  %p400_p8 = scmp.lt.u32.totalorder %s396_s22, %s496_s4 }
 0x12c   :  { %p402_p9 = pnand %p400_p8, %p397_p7 }
 0x12e   :  { %405 = shalt.err (!%p402_p9)
}
 0x12f   :  { %265 = dma.vmem_to_hbm [thread:$0]  %s260_s20, 256, %s496_s4, [#allocation4], %s413_s25, %s413_s25, %s414_s26  }
 0x130   :  { %410 = dma.done.wait [#allocation4], 256  }
 0x131   :  { %411 = vsyncadd [#allocation4], 4294967040 }
 0x132   :  { %269 = vsyncpa [#allocation3], 1 }
 0x133   :  { %270 = vsyncpa [#allocation6], 1 }
 0x134   :  { %271 = vsyncpa [#allocation4], 1 }

</bundles_post_ra>
